<compile_context>
chip_gen: v6e
topology: v6e:2x2x1
jax: 0.10.0
libtpu: 0.0.40
codegen_flags: <defaults>
</compile_context>

<pallas_src>
import functools

import jax
import jax.numpy as jnp
from jax.experimental import pallas as pl
from jax.experimental.pallas import tpu as pltpu


def _round_up(n, m):
    return ((n + m - 1) // m) * m


def _make_classifier_kernel(*, L, B_tile, conv_cins, n_head):
    """Fused kernel: 3x(conv+relu) -> global max-pool -> linear/MLP head."""
    n_conv = len(conv_cins)
    BL = B_tile * L

    def kernel(*refs):
        x_ref = refs[0]
        conv_w_refs = refs[1:1 + n_conv]
        head_refs = refs[1 + n_conv:1 + n_conv + 2 * n_head]
        o_ref = refs[1 + n_conv + 2 * n_head]
        pad_ref, xcol_ref, pool_ref = refs[1 + n_conv + 2 * n_head + 1:]

        # Lane i holds (batch b = i // L, time t = i % L).  Segment-boundary
        # masks are built with comparisons only (no vector integer div/mod).
        lane = jax.lax.broadcasted_iota(jnp.int32, (1, BL), 1)
        first = functools.reduce(
            jnp.logical_or, [lane == b * L for b in range(B_tile)])
        last = functools.reduce(
            jnp.logical_or, [lane == b * L + (L - 1) for b in range(B_tile)])

        h = x_ref[...]                                   # (C_in_pad, B*L) f32
        for w_ref, c_in in zip(conv_w_refs, conv_cins):
            # ---- in-kernel reflect 'same' padding via a VMEM halo buffer ----
            pad_ref[0:c_in, 1:1 + BL] = h
            left = pad_ref[0:c_in, 0:BL]                 # h[:, t-1]
            right = pad_ref[0:c_in, 2:2 + BL]            # h[:, t+1]
            # Boundary columns of each batch segment get the reflected value
            # (torch 'reflect': x[-1] := x[1],  x[L] := x[L-2]).
            tap_prev = jnp.where(first, right, left)     # x_pad[t-1]
            tap_next = jnp.where(last, left, right)      # x_pad[t+1]

            # ---- im2col in VMEM -> one MXU matmul, contraction K * c_in ----
            xcol_ref[0:c_in, :] = tap_prev
            xcol_ref[c_in:2 * c_in, :] = h
            xcol_ref[2 * c_in:3 * c_in, :] = tap_next
            acc = jnp.dot(w_ref[...], xcol_ref[0:3 * c_in, :],
                          preferred_element_type=jnp.float32)
            h = jnp.maximum(acc, 0.0)                    # fused ReLU

        # ---- global max-pool over time: one column per batch segment ----
        for b in range(B_tile):
            in_seg = jnp.logical_and(lane >= b * L, lane < (b + 1) * L)
            pool_ref[:, b:b + 1] = jnp.max(
                jnp.where(in_seg, h, -jnp.inf), axis=1, keepdims=True)
        y = pool_ref[...]                                # (128, B_tile)

        # ---- classification head, computed transposed: (features, B_tile) ----
        for j in range(n_head):
            w = head_refs[2 * j][...]                    # (F_out, F_in)
            bias = head_refs[2 * j + 1][...]             # (F_out, 1)
            y = jnp.dot(w, y, preferred_element_type=jnp.float32) + bias
            if j < n_head - 1:
                y = jnp.maximum(y, 0.0)
        o_ref[...] = y                                   # (num_classes, B_tile)

    return kernel


def classifier_forward(x_blc, params, args):
    """x_blc: (B, L, input_size) -> logits (B, num_classes)."""
    conv_ws = params["conv"]
    head = params["head"]
    K = args["kernel_size"]
    P = args["padding"]
    assert K == 3 and P == 1, "kernel written for kernel_size=3, padding=1"
    B, L, C_in = x_blc.shape
    assert L >= 2, "reflect padding needs L >= 2"
    num_classes = head[-1][0].shape[0]

    # ---- layout: NLC -> NCL, then collapse batch into the lane axis ----
    x2d = jnp.transpose(x_blc, (2, 0, 1)).reshape(C_in, B * L)
    cin0_p = _round_up(C_in, 8)                  # pad ch of layer 1 to sublane tile
    if cin0_p != C_in:
        x2d = jnp.pad(x2d, ((0, cin0_p - C_in), (0, 0)))

    # ---- conv weights -> (C_out, K*C_in_pad), tap-major along contraction ----
    w2ds, cins = [], []
    for li, w in enumerate(conv_ws):
        C_out, C_in_l, Kl = w.shape
        cin_p = _round_up(C_in_l, 8) if li == 0 else C_in_l
        assert li == 0 or C_in_l % 8 == 0, "hidden conv widths must be /8"
        wp = jnp.pad(w, ((0, 0), (0, cin_p - C_in_l), (0, 0)))
        w2ds.append(jnp.transpose(wp, (0, 2, 1)).reshape(C_out, Kl * cin_p))
        cins.append(cin_p)

    head_flat = []
    for W, b in head:
        head_flat += [W, b.reshape(-1, 1)]

    # Whole batch in one grid step: it trivially fits VMEM at these sizes and
    # avoids per-grid-step overhead.
    # TODO(synk): for large B*L, tile the batch axis in multiples of 128 lanes
    # (re-sized against v7x's 64 MiB VMEM) and keep this axis "parallel" so the
    # two v7x TensorCores split the work.
    B_TILE = B
    n_tiles = B // B_TILE
    BL = B_TILE * L
    c_last = conv_ws[-1].shape[0]                # 128

    kernel = _make_classifier_kernel(
        L=L, B_tile=B_TILE, conv_cins=tuple(cins), n_head=len(head))

    in_specs = [pl.BlockSpec((cin0_p, BL), lambda g: (0, g))]
    for w2d in w2ds:
        in_specs.append(pl.BlockSpec(w2d.shape, lambda g: (0, 0)))
    for arr in head_flat:
        in_specs.append(pl.BlockSpec(arr.shape, lambda g: (0, 0)))

    out_t = pl.pallas_call(
        kernel,
        out_shape=jax.ShapeDtypeStruct((num_classes, B), jnp.float32),
        grid=(n_tiles,),
        in_specs=in_specs,
        out_specs=pl.BlockSpec((num_classes, B_TILE), lambda g: (0, g)),
        scratch_shapes=[
            pltpu.VMEM((max(cins), BL + 2), jnp.float32),   # reflect halo buffer
            pltpu.VMEM((3 * max(cins), BL), jnp.float32),   # im2col slab
            pltpu.VMEM((c_last, B_TILE), jnp.float32),      # pooled features
        ],
        compiler_params=pltpu.CompilerParams(
            dimension_semantics=("parallel",)),
    )(x2d, *w2ds, *head_flat)

    return out_t.T                                # (B, num_classes)


def init_params(key, args):
    """Deterministic params: Conv1d weights (bias=False) + head Linear(s)."""
    input_size = args["input_size"]
    K = args["kernel_size"]
    plan = [(input_size, 32), (32, 64), (64, 128)]
    conv_ws = []
    for i, (ci, co) in enumerate(plan):
        k = jax.random.fold_in(key, i)
        bound = (ci * K) ** -0.5
        conv_ws.append(
            jax.random.uniform(k, (co, ci, K), jnp.float32, -bound, bound))

    if args["classification_model"] == "linear":
        dims = [(128, args["num_classes"])]
    else:  # 'mlp'
        dims = [(128, 256), (256, args["num_classes"])]
    head = []
    for j, (fi, fo) in enumerate(dims):
        kw = jax.random.fold_in(key, 100 + 2 * j)
        kb = jax.random.fold_in(key, 100 + 2 * j + 1)
        bound = fi ** -0.5
        W = jax.random.uniform(kw, (fo, fi), jnp.float32, -bound, bound)
        b = jax.random.uniform(kb, (fo,), jnp.float32, -bound, bound)
        head.append((W, b))
    return {"conv": conv_ws, "head": head}


def _reference_forward(x_blc, params, args):
    """Pure-JAX reference (no Pallas) of the Classifier forward."""
    P = args["padding"]
    h = jnp.transpose(x_blc, (0, 2, 1))                     # (B, C, L)
    for w in params["conv"]:                                # (C_out, C_in, K)
        K = w.shape[-1]
        hp = jnp.pad(h, ((0, 0), (0, 0), (P, P)), mode="reflect")
        L_out = hp.shape[-1] - K + 1
        acc = jnp.zeros((h.shape[0], w.shape[0], L_out), jnp.float32)
        for k in range(K):
            acc = acc + jnp.einsum("oi,bil->bol", w[:, :, k],
                                   hp[:, :, k:k + L_out])
        h = jnp.maximum(acc, 0.0)
    y = jnp.max(h, axis=-1)                                 # max_pool1d(L).squeeze
    n = len(params["head"])
    for j, (W, b) in enumerate(params["head"]):
        y = y @ W.T + b
        if j < n - 1:
            y = jnp.maximum(y, 0.0)
    return y


if __name__ == "__main__":
    base_args = {"input_size": 4, "kernel_size": 3, "padding": 1,
                 "num_classes": 5}
    B, L = 2, 16

    key = jax.random.PRNGKey(0)
    xkey, pkey = jax.random.split(key)
    x = jax.random.normal(xkey, (B, L, base_args["input_size"]), jnp.float32)

    for idx, clf in enumerate(("linear", "mlp")):
        args = dict(base_args)
        args["classification_model"] = clf
        params = init_params(jax.random.fold_in(pkey, idx), args)

        out = classifier_forward(x, params, args)
        out = jax.block_until_ready(out)

        ref = _reference_forward(x, params, args)
        assert out.shape == (B, args["num_classes"]), out.shape
        assert bool(jnp.allclose(out, ref, atol=1e-4, rtol=1e-4)), \
            f"{clf}: mismatch vs reference"

    print("KERNEL_OK")
</pallas_src>

<mosaic_0001>
module attributes {stable_mosaic.version = 11 : i64} {
  func.func @kernel(%arg0: i32, %arg1: memref<8x32xf32, #tpu.memory_space<vmem>>, %arg2: memref<32x24xf32, #tpu.memory_space<vmem>>, %arg3: memref<64x96xf32, #tpu.memory_space<vmem>>, %arg4: memref<128x192xf32, #tpu.memory_space<vmem>>, %arg5: memref<5x128xf32, #tpu.memory_space<vmem>>, %arg6: memref<5x1xf32, #tpu.memory_space<vmem>>, %arg7: memref<5x2xf32, #tpu.memory_space<vmem>>, %arg8: memref<64x34xf32, #tpu.memory_space<vmem>>, %arg9: memref<192x32xf32, #tpu.memory_space<vmem>>, %arg10: memref<128x2xf32, #tpu.memory_space<vmem>>) attributes {dimension_semantics = [#tpu.dimension_semantics<parallel>], iteration_bounds = array<i64: 1>, scalar_prefetch = 0 : i64, scratch_operands = 3 : i64, tpu.core_type = #tpu.core_type<tc>, window_params = [{transform_indices = @transform_0, window_bounds = array<i64: 8, 32>}, {pipeline_mode = #tpu.pipeline_mode<synchronous>, transform_indices = @transform_1, window_bounds = array<i64: 32, 24>}, {pipeline_mode = #tpu.pipeline_mode<synchronous>, transform_indices = @transform_2, window_bounds = array<i64: 64, 96>}, {pipeline_mode = #tpu.pipeline_mode<synchronous>, transform_indices = @transform_3, window_bounds = array<i64: 128, 192>}, {pipeline_mode = #tpu.pipeline_mode<synchronous>, transform_indices = @transform_4, window_bounds = array<i64: 5, 128>}, {pipeline_mode = #tpu.pipeline_mode<synchronous>, transform_indices = @transform_5, window_bounds = array<i64: 5, 1>}, {transform_indices = @transform_6, window_bounds = array<i64: 5, 2>}]} {
    %0 = tpu.iota {dimensions = array<i32: 1>} : vector<1x32xi32>
    %c0_i32 = arith.constant 0 : i32
    %1 = vector.broadcast %c0_i32 : i32 to vector<1x32xi32>
    %2 = arith.cmpi eq, %0, %1 : vector<1x32xi32>
    %c16_i32 = arith.constant 16 : i32
    %3 = vector.broadcast %c16_i32 : i32 to vector<1x32xi32>
    %4 = arith.cmpi eq, %0, %3 : vector<1x32xi32>
    %5 = arith.ori %2, %4 : vector<1x32xi1>
    %c15_i32 = arith.constant 15 : i32
    %6 = vector.broadcast %c15_i32 : i32 to vector<1x32xi32>
    %7 = arith.cmpi eq, %0, %6 : vector<1x32xi32>
    %c31_i32 = arith.constant 31 : i32
    %8 = vector.broadcast %c31_i32 : i32 to vector<1x32xi32>
    %9 = arith.cmpi eq, %0, %8 : vector<1x32xi32>
    %10 = arith.ori %7, %9 : vector<1x32xi1>
    %c0 = arith.constant 0 : index
    %c0_0 = arith.constant 0 : index
    %11 = vector.load %arg1[%c0, %c0_0] : memref<8x32xf32, #tpu.memory_space<vmem>>, vector<8x32xf32>
    %c0_1 = arith.constant 0 : index
    %c1 = arith.constant 1 : index
    %12 = vector.load %arg8[%c0_1, %c1] : memref<64x34xf32, #tpu.memory_space<vmem>>, vector<8x32xf32>
    tpu.vector_store %arg8[%c0_1, %c1], %11 {strides = array<i32>} : memref<64x34xf32, #tpu.memory_space<vmem>>, vector<8x32xf32>,
    %c0_2 = arith.constant 0 : index
    %c0_3 = arith.constant 0 : index
    %13 = vector.load %arg8[%c0_2, %c0_3] : memref<64x34xf32, #tpu.memory_space<vmem>>, vector<8x32xf32>
    %c0_4 = arith.constant 0 : index
    %c2 = arith.constant 2 : index
    %14 = vector.load %arg8[%c0_4, %c2] : memref<64x34xf32, #tpu.memory_space<vmem>>, vector<8x32xf32>
    %15 = vector.shape_cast %5 : vector<1x32xi1> to vector<1x32xi1>
    %16 = vector.broadcast %15 : vector<1x32xi1> to vector<8x32xi1>
    %17 = arith.select %16, %14, %13 : vector<8x32xi1>, vector<8x32xf32>
    %18 = vector.shape_cast %10 : vector<1x32xi1> to vector<1x32xi1>
    %19 = vector.broadcast %18 : vector<1x32xi1> to vector<8x32xi1>
    %20 = arith.select %19, %13, %14 : vector<8x32xi1>, vector<8x32xf32>
    %c0_5 = arith.constant 0 : index
    %c0_6 = arith.constant 0 : index
    %21 = vector.load %arg9[%c0_5, %c0_6] : memref<192x32xf32, #tpu.memory_space<vmem>>, vector<8x32xf32>
    tpu.vector_store %arg9[%c0_5, %c0_6], %17 {strides = array<i32>} : memref<192x32xf32, #tpu.memory_space<vmem>>, vector<8x32xf32>,
    %c8 = arith.constant 8 : index
    %c0_7 = arith.constant 0 : index
    %22 = vector.load %arg9[%c8, %c0_7] : memref<192x32xf32, #tpu.memory_space<vmem>>, vector<8x32xf32>
    tpu.vector_store %arg9[%c8, %c0_7], %11 {strides = array<i32>} : memref<192x32xf32, #tpu.memory_space<vmem>>, vector<8x32xf32>,
    %c16 = arith.constant 16 : index
    %c0_8 = arith.constant 0 : index
    %23 = vector.load %arg9[%c16, %c0_8] : memref<192x32xf32, #tpu.memory_space<vmem>>, vector<8x32xf32>
    tpu.vector_store %arg9[%c16, %c0_8], %20 {strides = array<i32>} : memref<192x32xf32, #tpu.memory_space<vmem>>, vector<8x32xf32>,
    %c0_9 = arith.constant 0 : index
    %c0_10 = arith.constant 0 : index
    %24 = vector.load %arg2[%c0_9, %c0_10] : memref<32x24xf32, #tpu.memory_space<vmem>>, vector<32x24xf32>
    %c0_11 = arith.constant 0 : index
    %c0_12 = arith.constant 0 : index
    %25 = vector.load %arg9[%c0_11, %c0_12] : memref<192x32xf32, #tpu.memory_space<vmem>>, vector<24x32xf32>
    %cst = arith.constant dense<0.000000e+00> : vector<32x32xf32>
    %26 = tpu.matmul %24, %25, %cst {dimension_numbers = #tpu.dot_dimension_numbers<[1], [0], [0], [1], [0, 0, 1, 1], [], []>} : vector<32x24xf32>, vector<24x32xf32>, vector<32x32xf32> -> vector<32x32xf32>
    %cst_13 = arith.constant 0.000000e+00 : f32
    %27 = vector.broadcast %cst_13 : f32 to vector<32x32xf32>
    %28 = arith.maximumf %26, %27 : vector<32x32xf32>
    %c0_14 = arith.constant 0 : index
    %c1_15 = arith.constant 1 : index
    %29 = vector.load %arg8[%c0_14, %c1_15] : memref<64x34xf32, #tpu.memory_space<vmem>>, vector<32x32xf32>
    tpu.vector_store %arg8[%c0_14, %c1_15], %28 {strides = array<i32>} : memref<64x34xf32, #tpu.memory_space<vmem>>, vector<32x32xf32>,
    %c0_16 = arith.constant 0 : index
    %c0_17 = arith.constant 0 : index
    %30 = vector.load %arg8[%c0_16, %c0_17] : memref<64x34xf32, #tpu.memory_space<vmem>>, vector<32x32xf32>
    %c0_18 = arith.constant 0 : index
    %c2_19 = arith.constant 2 : index
    %31 = vector.load %arg8[%c0_18, %c2_19] : memref<64x34xf32, #tpu.memory_space<vmem>>, vector<32x32xf32>
    %32 = vector.shape_cast %5 : vector<1x32xi1> to vector<1x32xi1>
    %33 = vector.broadcast %32 : vector<1x32xi1> to vector<32x32xi1>
    %34 = arith.select %33, %31, %30 : vector<32x32xi1>, vector<32x32xf32>
    %35 = vector.shape_cast %10 : vector<1x32xi1> to vector<1x32xi1>
    %36 = vector.broadcast %35 : vector<1x32xi1> to vector<32x32xi1>
    %37 = arith.select %36, %30, %31 : vector<32x32xi1>, vector<32x32xf32>
    %c0_20 = arith.constant 0 : index
    %c0_21 = arith.constant 0 : index
    %38 = vector.load %arg9[%c0_20, %c0_21] : memref<192x32xf32, #tpu.memory_space<vmem>>, vector<32x32xf32>
    tpu.vector_store %arg9[%c0_20, %c0_21], %34 {strides = array<i32>} : memref<192x32xf32, #tpu.memory_space<vmem>>, vector<32x32xf32>,
    %c32 = arith.constant 32 : index
    %c0_22 = arith.constant 0 : index
    %39 = vector.load %arg9[%c32, %c0_22] : memref<192x32xf32, #tpu.memory_space<vmem>>, vector<32x32xf32>
    tpu.vector_store %arg9[%c32, %c0_22], %28 {strides = array<i32>} : memref<192x32xf32, #tpu.memory_space<vmem>>, vector<32x32xf32>,
    %c64 = arith.constant 64 : index
    %c0_23 = arith.constant 0 : index
    %40 = vector.load %arg9[%c64, %c0_23] : memref<192x32xf32, #tpu.memory_space<vmem>>, vector<32x32xf32>
    tpu.vector_store %arg9[%c64, %c0_23], %37 {strides = array<i32>} : memref<192x32xf32, #tpu.memory_space<vmem>>, vector<32x32xf32>,
    %c0_24 = arith.constant 0 : index
    %c0_25 = arith.constant 0 : index
    %41 = vector.load %arg3[%c0_24, %c0_25] : memref<64x96xf32, #tpu.memory_space<vmem>>, vector<64x96xf32>
    %c0_26 = arith.constant 0 : index
    %c0_27 = arith.constant 0 : index
    %42 = vector.load %arg9[%c0_26, %c0_27] : memref<192x32xf32, #tpu.memory_space<vmem>>, vector<96x32xf32>
    %cst_28 = arith.constant dense<0.000000e+00> : vector<64x32xf32>
    %43 = tpu.matmul %41, %42, %cst_28 {dimension_numbers = #tpu.dot_dimension_numbers<[1], [0], [0], [1], [0, 0, 1, 1], [], []>} : vector<64x96xf32>, vector<96x32xf32>, vector<64x32xf32> -> vector<64x32xf32>
    %cst_29 = arith.constant 0.000000e+00 : f32
    %44 = vector.broadcast %cst_29 : f32 to vector<64x32xf32>
    %45 = arith.maximumf %43, %44 : vector<64x32xf32>
    %c0_30 = arith.constant 0 : index
    %c1_31 = arith.constant 1 : index
    %46 = vector.load %arg8[%c0_30, %c1_31] : memref<64x34xf32, #tpu.memory_space<vmem>>, vector<64x32xf32>
    tpu.vector_store %arg8[%c0_30, %c1_31], %45 {strides = array<i32>} : memref<64x34xf32, #tpu.memory_space<vmem>>, vector<64x32xf32>,
    %c0_32 = arith.constant 0 : index
    %c0_33 = arith.constant 0 : index
    %47 = vector.load %arg8[%c0_32, %c0_33] : memref<64x34xf32, #tpu.memory_space<vmem>>, vector<64x32xf32>
    %c0_34 = arith.constant 0 : index
    %c2_35 = arith.constant 2 : index
    %48 = vector.load %arg8[%c0_34, %c2_35] : memref<64x34xf32, #tpu.memory_space<vmem>>, vector<64x32xf32>
    %49 = vector.shape_cast %5 : vector<1x32xi1> to vector<1x32xi1>
    %50 = vector.broadcast %49 : vector<1x32xi1> to vector<64x32xi1>
    %51 = arith.select %50, %48, %47 : vector<64x32xi1>, vector<64x32xf32>
    %52 = vector.shape_cast %10 : vector<1x32xi1> to vector<1x32xi1>
    %53 = vector.broadcast %52 : vector<1x32xi1> to vector<64x32xi1>
    %54 = arith.select %53, %47, %48 : vector<64x32xi1>, vector<64x32xf32>
    %c0_36 = arith.constant 0 : index
    %c0_37 = arith.constant 0 : index
    %55 = vector.load %arg9[%c0_36, %c0_37] : memref<192x32xf32, #tpu.memory_space<vmem>>, vector<64x32xf32>
    tpu.vector_store %arg9[%c0_36, %c0_37], %51 {strides = array<i32>} : memref<192x32xf32, #tpu.memory_space<vmem>>, vector<64x32xf32>,
    %c64_38 = arith.constant 64 : index
    %c0_39 = arith.constant 0 : index
    %56 = vector.load %arg9[%c64_38, %c0_39] : memref<192x32xf32, #tpu.memory_space<vmem>>, vector<64x32xf32>
    tpu.vector_store %arg9[%c64_38, %c0_39], %45 {strides = array<i32>} : memref<192x32xf32, #tpu.memory_space<vmem>>, vector<64x32xf32>,
    %c128 = arith.constant 128 : index
    %c0_40 = arith.constant 0 : index
    %57 = vector.load %arg9[%c128, %c0_40] : memref<192x32xf32, #tpu.memory_space<vmem>>, vector<64x32xf32>
    tpu.vector_store %arg9[%c128, %c0_40], %54 {strides = array<i32>} : memref<192x32xf32, #tpu.memory_space<vmem>>, vector<64x32xf32>,
    %c0_41 = arith.constant 0 : index
    %c0_42 = arith.constant 0 : index
    %58 = vector.load %arg4[%c0_41, %c0_42] : memref<128x192xf32, #tpu.memory_space<vmem>>, vector<128x192xf32>
    %c0_43 = arith.constant 0 : index
    %c0_44 = arith.constant 0 : index
    %59 = vector.load %arg9[%c0_43, %c0_44] : memref<192x32xf32, #tpu.memory_space<vmem>>, vector<192x32xf32>
    %cst_45 = arith.constant dense<0.000000e+00> : vector<128x32xf32>
    %60 = tpu.matmul %58, %59, %cst_45 {dimension_numbers = #tpu.dot_dimension_numbers<[1], [0], [0], [1], [0, 0, 1, 1], [], []>} : vector<128x192xf32>, vector<192x32xf32>, vector<128x32xf32> -> vector<128x32xf32>
    %cst_46 = arith.constant 0.000000e+00 : f32
    %61 = vector.broadcast %cst_46 : f32 to vector<128x32xf32>
    %62 = arith.maximumf %60, %61 : vector<128x32xf32>
    %c0_i32_47 = arith.constant 0 : i32
    %63 = vector.broadcast %c0_i32_47 : i32 to vector<1x32xi32>
    %64 = arith.cmpi sge, %0, %63 : vector<1x32xi32>
    %c16_i32_48 = arith.constant 16 : i32
    %65 = vector.broadcast %c16_i32_48 : i32 to vector<1x32xi32>
    %66 = arith.cmpi slt, %0, %65 : vector<1x32xi32>
    %67 = arith.andi %64, %66 : vector<1x32xi1>
    %cst_49 = arith.constant 0xFF800000 : f32
    %68 = vector.shape_cast %67 : vector<1x32xi1> to vector<1x32xi1>
    %69 = vector.broadcast %68 : vector<1x32xi1> to vector<128x32xi1>
    %70 = vector.broadcast %cst_49 : f32 to vector<128x32xf32>
    %71 = arith.select %69, %62, %70 : vector<128x32xi1>, vector<128x32xf32>
    %cst_50 = arith.constant dense<0xFF800000> : vector<128xf32>
    %72 = vector.multi_reduction <maximumf>, %71, %cst_50 [1] : vector<128x32xf32> to vector<128xf32>
    %73 = vector.shape_cast %72 : vector<128xf32> to vector<128x1xf32>
    %c0_51 = arith.constant 0 : index
    %c0_52 = arith.constant 0 : index
    %74 = vector.load %arg10[%c0_51, %c0_52] : memref<128x2xf32, #tpu.memory_space<vmem>>, vector<128x1xf32>
    tpu.vector_store %arg10[%c0_51, %c0_52], %73 {strides = array<i32>} : memref<128x2xf32, #tpu.memory_space<vmem>>, vector<128x1xf32>,
    %c16_i32_53 = arith.constant 16 : i32
    %75 = vector.broadcast %c16_i32_53 : i32 to vector<1x32xi32>
    %76 = arith.cmpi sge, %0, %75 : vector<1x32xi32>
    %c32_i32 = arith.constant 32 : i32
    %77 = vector.broadcast %c32_i32 : i32 to vector<1x32xi32>
    %78 = arith.cmpi slt, %0, %77 : vector<1x32xi32>
    %79 = arith.andi %76, %78 : vector<1x32xi1>
    %cst_54 = arith.constant 0xFF800000 : f32
    %80 = vector.shape_cast %79 : vector<1x32xi1> to vector<1x32xi1>
    %81 = vector.broadcast %80 : vector<1x32xi1> to vector<128x32xi1>
    %82 = vector.broadcast %cst_54 : f32 to vector<128x32xf32>
    %83 = arith.select %81, %62, %82 : vector<128x32xi1>, vector<128x32xf32>
    %cst_55 = arith.constant dense<0xFF800000> : vector<128xf32>
    %84 = vector.multi_reduction <maximumf>, %83, %cst_55 [1] : vector<128x32xf32> to vector<128xf32>
    %85 = vector.shape_cast %84 : vector<128xf32> to vector<128x1xf32>
    %c0_56 = arith.constant 0 : index
    %c1_57 = arith.constant 1 : index
    %86 = vector.load %arg10[%c0_56, %c1_57] : memref<128x2xf32, #tpu.memory_space<vmem>>, vector<128x1xf32>
    tpu.vector_store %arg10[%c0_56, %c1_57], %85 {strides = array<i32>} : memref<128x2xf32, #tpu.memory_space<vmem>>, vector<128x1xf32>,
    %c0_58 = arith.constant 0 : index
    %c0_59 = arith.constant 0 : index
    %87 = vector.load %arg10[%c0_58, %c0_59] : memref<128x2xf32, #tpu.memory_space<vmem>>, vector<128x2xf32>
    %c0_60 = arith.constant 0 : index
    %c0_61 = arith.constant 0 : index
    %88 = vector.load %arg5[%c0_60, %c0_61] : memref<5x128xf32, #tpu.memory_space<vmem>>, vector<5x128xf32>
    %c0_62 = arith.constant 0 : index
    %c0_63 = arith.constant 0 : index
    %89 = vector.load %arg6[%c0_62, %c0_63] : memref<5x1xf32, #tpu.memory_space<vmem>>, vector<5x1xf32>
    %cst_64 = arith.constant dense<0.000000e+00> : vector<5x2xf32>
    %90 = tpu.matmul %88, %87, %cst_64 {dimension_numbers = #tpu.dot_dimension_numbers<[1], [0], [0], [1], [0, 0, 1, 1], [], []>} : vector<5x128xf32>, vector<128x2xf32>, vector<5x2xf32> -> vector<5x2xf32>
    %91 = vector.broadcast %89 : vector<5x1xf32> to vector<5x2xf32>
    %92 = arith.addf %90, %91 : vector<5x2xf32>
    %c0_65 = arith.constant 0 : index
    %c0_66 = arith.constant 0 : index
    %93 = vector.load %arg7[%c0_65, %c0_66] : memref<5x2xf32, #tpu.memory_space<vmem>>, vector<5x2xf32>
    tpu.vector_store %arg7[%c0_65, %c0_66], %92 {strides = array<i32>} : memref<5x2xf32, #tpu.memory_space<vmem>>, vector<5x2xf32>,
    return
  }
  func.func @transform_0(%arg0: i32) -> (i32, i32) {
    %c0_i32 = arith.constant 0 : i32
    %c0_i32_0 = arith.constant 0 : i32
    return %c0_i32, %arg0 : i32, i32
  }
  func.func @transform_1(%arg0: i32) -> (i32, i32) {
    %c0_i32 = arith.constant 0 : i32
    %c0_i32_0 = arith.constant 0 : i32
    %c0_i32_1 = arith.constant 0 : i32
    return %c0_i32, %c0_i32_0 : i32, i32
  }
  func.func @transform_2(%arg0: i32) -> (i32, i32) {
    %c0_i32 = arith.constant 0 : i32
    %c0_i32_0 = arith.constant 0 : i32
    %c0_i32_1 = arith.constant 0 : i32
    return %c0_i32, %c0_i32_0 : i32, i32
  }
  func.func @transform_3(%arg0: i32) -> (i32, i32) {
    %c0_i32 = arith.constant 0 : i32
    %c0_i32_0 = arith.constant 0 : i32
    %c0_i32_1 = arith.constant 0 : i32
    return %c0_i32, %c0_i32_0 : i32, i32
  }
  func.func @transform_4(%arg0: i32) -> (i32, i32) {
    %c0_i32 = arith.constant 0 : i32
    %c0_i32_0 = arith.constant 0 : i32
    %c0_i32_1 = arith.constant 0 : i32
    return %c0_i32, %c0_i32_0 : i32, i32
  }
  func.func @transform_5(%arg0: i32) -> (i32, i32) {
    %c0_i32 = arith.constant 0 : i32
    %c0_i32_0 = arith.constant 0 : i32
    %c0_i32_1 = arith.constant 0 : i32
    return %c0_i32, %c0_i32_0 : i32, i32
  }
  func.func @transform_6(%arg0: i32) -> (i32, i32) {
    %c0_i32 = arith.constant 0 : i32
    %c0_i32_0 = arith.constant 0 : i32
    return %c0_i32, %arg0 : i32, i32
  }
}

</mosaic_0001>

<bundles_post_ra>
// kernel: tpu_custom_call.1
= control target key start
LH: loop header
LB: loop body
LE: loop exit
PB: predicated region body
PF: predicated region fallthrough
CT: control target
= control target key end

     0   :  { %vm49_vm0 = vcmask 261120   ;;  %s1199_s23 = smov 1   ;;  %vm36_vm1 = vcmask 269320   ;;  %s1200_s24 = smov 126   ;;  %vm60_vm2 = vcmask 195584   ;;  %v23_v4 = vlaneseq  ;;  %s1762_s0 = inlined_call_operand.vmem [shape: f32[8,32], index: 0, kind: input, shape index: {}]   ;;  %s1763_s1 = inlined_call_operand.vmem [shape: f32[32,24], index: 1, kind: input, shape index: {}]   ;;  %s1764_s2 = inlined_call_operand.vmem [shape: f32[64,96], index: 2, kind: input, shape index: {}]   ;;  %s1765_s3 = inlined_call_operand.vmem [shape: f32[128,192], index: 3, kind: input, shape index: {}]   ;;  %s1766_s5 = inlined_call_operand.vmem [shape: f32[5,1], index: 5, kind: input, shape index: {}]   ;;  %s1767_s4 = inlined_call_operand.vmem [shape: f32[5,128], index: 4, kind: input, shape index: {}]   ;;  %s1768_s6 = inlined_call_operand.vmem [shape: f32[5,2], index: 6, kind: output, shape index: {}]  }
   0x1   :  { %v31_v0 = vld [vmem:[%s1762_s0] sm:$0xff]  ;;  %v54_v14 = vld [vmem:[%s1763_s1 + $0x8] sm:$0xff]  ;;  %v55_v15 = vld [vmem:[%s1763_s1 + $0x10] sm:$0xff]  ;;  %vm242_vm9 = vcmask 785408   ;;  %vm556_vm10 = vcmask 523264   ;;  %vm1202_vm15 = vmmov 0  }
   0x2   :  { %33 = vrot.lane.b32.xlu0 %v31_v0, %s1199_s23  ;;  %51 = vst.msk [vmem:[#allocation3 + $0x8] sm:$0xff] %vm49_vm0, %v31_v0  ;;  %v53_v3 = vld [vmem:[%s1763_s1] sm:$0xff]  ;;  %v1250_v5 = vand.u32 127, %v23_v4  ;;  %v56_v16 = vld [vmem:[%s1763_s1 + $0x18] sm:$0xff]  ;;  %v223_v58 = vld [vmem:[%s1764_s2 + $0x8] sm:$0xff] }
   0x3   :  { %1115 = vmatprep.mubr.msk.f32.mxu1 %vm60_vm2, %v53_v3  ;;  %v222_v33 = vld [vmem:[%s1764_s2] sm:$0xff]  ;;  %v224_v59 = vld [vmem:[%s1764_s2 + $0x10] sm:$0xff]  ;;  %v225_v60 = vld [vmem:[%s1764_s2 + $0x18] sm:$0xff] }
   0x4   :  { %vm25_vm3 = vcmp.eq.s32.totalorder %v1250_v5, 0  ;;  %vm26_vm4 = vcmp.eq.s32.totalorder %v1250_v5, 16  ;;  %vm28_vm5 = vcmp.eq.s32.totalorder %v1250_v5, 15  ;;  %vm29_vm6 = vcmp.eq.s32.totalorder %v1250_v5, 31  ;;  %v226_v61 = vld [vmem:[%s1764_s2 + $0x20] sm:$0xff]  ;;  %v227_v62 = vld [vmem:[%s1764_s2 + $0x28] sm:$0xff] }
   0x5   :  { %vm1256_vm7 = vmor %vm25_vm3, %vm26_vm4  ;;  %v228_v63 = vld [vmem:[%s1764_s2 + $0x30] sm:$0xff]  ;;  %v229_v0 = vld [vmem:[%s1764_s2 + $0x38] sm:$0xff]  ;;  %vm852_vm11 = vcmp.ge.s32.totalorder %v1250_v5, 16  ;;  %vm853_vm12 = vcmp.lt.s32.totalorder %v1250_v5, 32  ;;  %vm767_vm14 = vcmp.lt.s32.totalorder %v1250_v5, 16 }
   0x6   :  { %vm1260_vm8 = vmor %vm28_vm5, %vm29_vm6  ;;  %v955_v5 = vld [vmem:[%s1766_s5] sm:$0x1f] }
   0x7   :  { %vm1575_vm13 = vmand %vm852_vm11, %vm853_vm12 }
   0x9   :  { %v58_v12 = vld [vmem:[#allocation3 + $0x8] sm:$0xff] }
  0x74   :  { %v34_v1 = vpop.permute.xlu0 %33 }
  0x75   :  { %37 = vst.msk [vmem:[#allocation2] sm:$0xff] %vm36_vm1, %v34_v1  ;;  %v1201_v1 = vmov 0.0  }
  0x76   :  { %605 = vmatprep.subr.mxu0 %v1201_v1 }
  0x7c   :  { %v38_v2 = vld [vmem:[#allocation2] sm:$0xff] }
  0x7d   :  { %42 = vrot.lane.b32.xlu0 %v38_v2, %s1200_s24 }
  0xef   :  { %v43_v8 = vpop.permute.xlu0 %42 }
  0xf0   :  { %v45_v9 = vsel %vm1256_vm7, %v43_v8, %v38_v2  ;;  %v48_v10 = vsel %vm1260_vm8, %v38_v2, %v43_v8 }
  0xf1   :  { %50 = vst.msk [vmem:[#allocation3] sm:$0xff] %vm49_vm0, %v45_v9  ;;  %52 = vst.msk [vmem:[#allocation3 + $0x10] sm:$0xff] %vm49_vm0, %v48_v10 }
  0xf8   :  { %v59_v11 = vld [vmem:[#allocation3 + $0x10] sm:$0xff]  ;;  %v57_v13 = vld [vmem:[#allocation3] sm:$0xff] }
  0xf9   :  { %1109 = vmatprep.subr.mxu1 %v59_v11 }
  0xfa   :  { %1110 = vmatpush3.msra.mxu1 %v59_v11 }
  0xfb   :  { %1111 = vmatprep.subr.mxu1 %v58_v12 }
  0xfc   :  { %1112 = vmatpush3.msra.mxu1 %v58_v12 }
  0xfd   :  { %1113 = vmatprep.subr.mxu1 %v57_v13 }
  0xfe   :  { %1114 = vmatpush3.msra.mxu1 %v57_v13 }
  0xff   :  { %1116 = vmatmul.mubr.msk.f32.vlgmr.msra.gmra.mxu1 %vm60_vm2, %v54_v14 }
 0x100   :  { %1118 = vmatprep.mubr.msk.f32.mxu1 %vm60_vm2, %v55_v15 }
 0x103   :  { %1119 = vmatmul.mubr.msk.f32.gmra.mxu1 %vm60_vm2, %v56_v16  ;;  %vm921_vm2 = vcmask 15368  }
 0x104   :  { %1145 = vmatprep.mubr.msk.f32.mxu1 %vm242_vm9, %v222_v33 }
 0x1bf   :  { %v1117_v17 = vpop.f32.mrf.mxu1 }
 0x1c0   :  { %v159_v18 = vmax.f32 %v1117_v17, 0.0 }
 0x1c1   :  { %v139_v19 = vpop.f32.mrf.mxu1 }
 0x1c2   :  { %215 = vst.msk [vmem:[#allocation3 + $0x28] sm:$0xff] %vm49_vm0, %v159_v18  ;;  %v158_v20 = vmax.f32 %v139_v19, 0.0  ;;  %168 = vrot.lane.b32.xlu0 %v159_v18, %s1199_s23 }
 0x1c3   :  { %v1120_v21 = vpop.f32.mrf.mxu1 }
 0x1c4   :  { %214 = vst.msk [vmem:[#allocation3 + $0x20] sm:$0xff] %vm49_vm0, %v158_v20  ;;  %v161_v22 = vmax.f32 %v1120_v21, 0.0 }
 0x1c5   :  { %v149_v23 = vpop.f32.mrf.mxu1 }
 0x1c6   :  { %217 = vst.msk [vmem:[#allocation3 + $0x38] sm:$0xff] %vm49_vm0, %v161_v22  ;;  %v160_v24 = vmax.f32 %v149_v23, 0.0  ;;  %172 = vrot.lane.b32.xlu1 %v161_v22, %s1199_s23 }
 0x1c8   :  { %216 = vst.msk [vmem:[#allocation3 + $0x30] sm:$0xff] %vm49_vm0, %v160_v24 }
 0x1c9   :  { %v235_v52 = vld [vmem:[#allocation3 + $0x28] sm:$0xff] }
 0x1ca   :  { %170 = vrot.lane.b32.xlu1 %v160_v24, %s1199_s23 }
 0x1cb   :  { %v234_v53 = vld [vmem:[#allocation3 + $0x20] sm:$0xff] }
 0x1cd   :  { %v237_v50 = vld [vmem:[#allocation3 + $0x38] sm:$0xff] }
 0x1ce   :  { %166 = vrot.lane.b32.xlu1 %v158_v20, %s1199_s23 }
 0x1cf   :  { %v236_v51 = vld [vmem:[#allocation3 + $0x30] sm:$0xff] }
 0x234   :  { %v169_v25 = vpop.permute.xlu0 %168 }
 0x235   :  { %179 = vst.msk [vmem:[#allocation2 + $0x8] sm:$0xff] %vm36_vm1, %v169_v25 }
 0x238   :  { %v173_v26 = vpop.permute.xlu1 %172 }
 0x239   :  { %181 = vst.msk [vmem:[#allocation2 + $0x18] sm:$0xff] %vm36_vm1, %v173_v26 }
 0x23c   :  { %v171_v27 = vpop.permute.xlu1 %170  ;;  %v183_v30 = vld [vmem:[#allocation2 + $0x8] sm:$0xff] }
 0x23d   :  { %180 = vst.msk [vmem:[#allocation2 + $0x10] sm:$0xff] %vm36_vm1, %v171_v27 }
 0x240   :  { %v167_v28 = vpop.permute.xlu1 %166  ;;  %v185_v29 = vld [vmem:[#allocation2 + $0x18] sm:$0xff] }
 0x241   :  { %178 = vst.msk [vmem:[#allocation2] sm:$0xff] %vm36_vm1, %v167_v28  ;;  %196 = vrot.lane.b32.xlu0 %v185_v29, %s1200_s24 }
 0x244   :  { %v184_v31 = vld [vmem:[#allocation2 + $0x10] sm:$0xff] }
 0x245   :  { %192 = vrot.lane.b32.xlu0 %v183_v30, %s1200_s24  ;;  %194 = vrot.lane.b32.xlu1 %v184_v31, %s1200_s24 }
 0x248   :  { %v182_v32 = vld [vmem:[#allocation2] sm:$0xff] }
 0x249   :  { %190 = vrot.lane.b32.xlu1 %v182_v32, %s1200_s24 }
 0x2b3   :  { %v197_v34 = vpop.permute.xlu0 %196 }
 0x2b4   :  { %v205_v35 = vsel %vm1256_vm7, %v197_v34, %v185_v29  ;;  %v209_v36 = vsel %vm1260_vm8, %v185_v29, %v197_v34 }
 0x2b5   :  { %213 = vst.msk [vmem:[#allocation3 + $0x18] sm:$0xff] %vm49_vm0, %v205_v35  ;;  %221 = vst.msk [vmem:[#allocation3 + $0x58] sm:$0xff] %vm49_vm0, %v209_v36 }
 0x2b7   :  { %v193_v37 = vpop.permute.xlu0 %192  ;;  %v195_v38 = vpop.permute.xlu1 %194 }
 0x2b8   :  { %v203_v39 = vsel %vm1256_vm7, %v193_v37, %v183_v30  ;;  %v207_v40 = vsel %vm1260_vm8, %v183_v30, %v193_v37  ;;  %v204_v41 = vsel %vm1256_vm7, %v195_v38, %v184_v31  ;;  %v208_v42 = vsel %vm1260_vm8, %v184_v31, %v195_v38 }
 0x2b9   :  { %211 = vst.msk [vmem:[#allocation3 + $0x8] sm:$0xff] %vm49_vm0, %v203_v39  ;;  %219 = vst.msk [vmem:[#allocation3 + $0x48] sm:$0xff] %vm49_vm0, %v207_v40 }
 0x2ba   :  { %212 = vst.msk [vmem:[#allocation3 + $0x10] sm:$0xff] %vm49_vm0, %v204_v41  ;;  %220 = vst.msk [vmem:[#allocation3 + $0x50] sm:$0xff] %vm49_vm0, %v208_v42 }
 0x2bb   :  { %v191_v43 = vpop.permute.xlu1 %190 }
 0x2bc   :  { %v202_v44 = vsel %vm1256_vm7, %v191_v43, %v182_v32  ;;  %v206_v45 = vsel %vm1260_vm8, %v182_v32, %v191_v43  ;;  %v241_v46 = vld [vmem:[#allocation3 + $0x58] sm:$0xff] }
 0x2bd   :  { %210 = vst.msk [vmem:[#allocation3] sm:$0xff] %vm49_vm0, %v202_v44  ;;  %218 = vst.msk [vmem:[#allocation3 + $0x40] sm:$0xff] %vm49_vm0, %v206_v45  ;;  %1121 = vmatprep.subr.mxu1 %v241_v46  ;;  %v233_v54 = vld [vmem:[#allocation3 + $0x18] sm:$0xff]  ;;  %v501_v45 = vld [vmem:[%s1765_s3 + $0x8] sm:$0xff] }
 0x2be   :  { %1122 = vmatpush3.msra.mxu1 %v241_v46  ;;  %1049 = vmatprep.mubr.msk.f32.mxu0 %vm556_vm10, %v501_v45  ;;  %v523_v45 = vld [vmem:[%s1765_s3 + $0xb8] sm:$0xff] }
 0x2c0   :  { %v239_v48 = vld [vmem:[#allocation3 + $0x48] sm:$0xff] }
 0x2c1   :  { %v240_v47 = vld [vmem:[#allocation3 + $0x50] sm:$0xff]  ;;  %v231_v56 = vld [vmem:[#allocation3 + $0x8] sm:$0xff] }
 0x2c2   :  { %1123 = vmatprep.subr.mxu1 %v240_v47  ;;  %v232_v55 = vld [vmem:[#allocation3 + $0x10] sm:$0xff] }
 0x2c3   :  { %1124 = vmatpush3.msra.mxu1 %v240_v47 }
 0x2c4   :  { %1125 = vmatprep.subr.mxu1 %v239_v48  ;;  %v238_v49 = vld [vmem:[#allocation3 + $0x40] sm:$0xff] }
 0x2c5   :  { %1126 = vmatpush3.msra.mxu1 %v239_v48  ;;  %v230_v57 = vld [vmem:[#allocation3] sm:$0xff] }
 0x2c6   :  { %1127 = vmatprep.subr.mxu1 %v238_v49 }
 0x2c7   :  { %1128 = vmatpush3.msra.mxu1 %v238_v49 }
 0x2c8   :  { %1129 = vmatprep.subr.mxu1 %v237_v50 }
 0x2c9   :  { %1130 = vmatpush3.msra.mxu1 %v237_v50 }
 0x2ca   :  { %1131 = vmatprep.subr.mxu1 %v236_v51 }
 0x2cb   :  { %1132 = vmatpush3.msra.mxu1 %v236_v51 }
 0x2cc   :  { %1133 = vmatprep.subr.mxu1 %v235_v52 }
 0x2cd   :  { %1134 = vmatpush3.msra.mxu1 %v235_v52 }
 0x2ce   :  { %1135 = vmatprep.subr.mxu1 %v234_v53 }
 0x2cf   :  { %1136 = vmatpush3.msra.mxu1 %v234_v53 }
 0x2d0   :  { %1137 = vmatprep.subr.mxu1 %v233_v54 }
 0x2d1   :  { %1138 = vmatpush3.msra.mxu1 %v233_v54 }
 0x2d2   :  { %1139 = vmatprep.subr.mxu1 %v232_v55 }
 0x2d3   :  { %1140 = vmatpush3.msra.mxu1 %v232_v55 }
 0x2d4   :  { %1141 = vmatprep.subr.mxu1 %v231_v56 }
 0x2d5   :  { %1142 = vmatpush3.msra.mxu1 %v231_v56 }
 0x2d6   :  { %1143 = vmatprep.subr.mxu1 %v230_v57 }
 0x2d7   :  { %1144 = vmatpush3.msra.mxu1 %v230_v57 }
 0x2d8   :  { %1146 = vmatmul.mubr.msk.f32.vlgmr.msra.gmra.mxu1 %vm242_vm9, %v223_v58  ;;  %1157 = vmatprep.subr.mxu1 %v1201_v1 }
 0x2d9   :  { %1148 = vmatprep.mubr.msk.f32.mxu1 %vm242_vm9, %v224_v59 }
 0x2dc   :  { %1149 = vmatmul.mubr.msk.f32.gmra.mxu1 %vm242_vm9, %v225_v60 }
 0x2dd   :  { %1151 = vmatprep.mubr.msk.f32.mxu1 %vm242_vm9, %v226_v61 }
 0x2e0   :  { %1152 = vmatmul.mubr.msk.f32.gmra.mxu1 %vm242_vm9, %v227_v62 }
 0x2e1   :  { %1154 = vmatprep.mubr.msk.f32.mxu1 %vm242_vm9, %v228_v63 }
 0x2e4   :  { %1155 = vmatmul.mubr.msk.f32.gmra.mxu1 %vm242_vm9, %v229_v0 }
 0x2e5   :  { %1189 = vmatprep.mubr.msk.f32.mxu1 %vm1202_vm15, %v1201_v1 }
 0x398   :  { %v1147_v2 = vpop.f32.mrf.mxu1 }
 0x399   :  { %v373_v3 = vmax.f32 %v1147_v2, 0.0 }
 0x39a   :  { %v333_v4 = vpop.f32.mrf.mxu1 }
 0x39b   :  { %485 = vst.msk [vmem:[#allocation3 + $0x48] sm:$0xff] %vm49_vm0, %v373_v3  ;;  %v372_v8 = vmax.f32 %v333_v4, 0.0 }
 0x39c   :  { %v1150_v9 = vpop.f32.mrf.mxu1 }
 0x39d   :  { %484 = vst.msk [vmem:[#allocation3 + $0x40] sm:$0xff] %vm49_vm0, %v372_v8  ;;  %v375_v10 = vmax.f32 %v1150_v9, 0.0 }
 0x39e   :  { %v343_v11 = vpop.f32.mrf.mxu1 }
 0x39f   :  { %487 = vst.msk [vmem:[#allocation3 + $0x58] sm:$0xff] %vm49_vm0, %v375_v10  ;;  %v374_v12 = vmax.f32 %v343_v11, 0.0 }
 0x3a0   :  { %v1153_v13 = vpop.f32.mrf.mxu1 }
 0x3a1   :  { %486 = vst.msk [vmem:[#allocation3 + $0x50] sm:$0xff] %vm49_vm0, %v374_v12  ;;  %v377_v14 = vmax.f32 %v1153_v13, 0.0 }
 0x3a2   :  { %v353_v15 = vpop.f32.mrf.mxu1  ;;  %v541_v27 = vld [vmem:[#allocation3 + $0x48] sm:$0xff] }
 0x3a3   :  { %489 = vst.msk [vmem:[#allocation3 + $0x68] sm:$0xff] %vm49_vm0, %v377_v14  ;;  %v376_v16 = vmax.f32 %v353_v15, 0.0 }
 0x3a4   :  { %v1156_v17 = vpop.f32.mrf.mxu1  ;;  %v540_v28 = vld [vmem:[#allocation3 + $0x40] sm:$0xff] }
 0x3a5   :  { %488 = vst.msk [vmem:[#allocation3 + $0x60] sm:$0xff] %vm49_vm0, %v376_v16  ;;  %v379_v18 = vmax.f32 %v1156_v17, 0.0 }
 0x3a6   :  { %v363_v19 = vpop.f32.mrf.mxu1  ;;  %v543_v25 = vld [vmem:[#allocation3 + $0x58] sm:$0xff] }
 0x3a7   :  { %491 = vst.msk [vmem:[#allocation3 + $0x78] sm:$0xff] %vm49_vm0, %v379_v18  ;;  %v378_v20 = vmax.f32 %v363_v19, 0.0  ;;  %402 = vrot.lane.b32.xlu0 %v379_v18, %s1199_s23 }
 0x3a8   :  { %v542_v26 = vld [vmem:[#allocation3 + $0x50] sm:$0xff] }
 0x3a9   :  { %490 = vst.msk [vmem:[#allocation3 + $0x70] sm:$0xff] %vm49_vm0, %v378_v20  ;;  %400 = vrot.lane.b32.xlu1 %v378_v20, %s1199_s23 }
 0x3aa   :  { %v545_v23 = vld [vmem:[#allocation3 + $0x68] sm:$0xff] }
 0x3ab   :  { %398 = vrot.lane.b32.xlu0 %v377_v14, %s1199_s23 }
 0x3ac   :  { %v544_v24 = vld [vmem:[#allocation3 + $0x60] sm:$0xff] }
 0x3ad   :  { %396 = vrot.lane.b32.xlu1 %v376_v16, %s1199_s23 }
 0x3ae   :  { %v547_v21 = vld [vmem:[#allocation3 + $0x78] sm:$0xff] }
 0x3af   :  { %394 = vrot.lane.b32.xlu0 %v375_v10, %s1199_s23  ;;  %606 = vmatpush1.msra.mxu0 %v547_v21 }
 0x3b0   :  { %607 = vmatprep.subr.mxu0 %v1201_v1  ;;  %v546_v22 = vld [vmem:[#allocation3 + $0x70] sm:$0xff] }
 0x3b1   :  { %392 = vrot.lane.b32.xlu1 %v374_v12, %s1199_s23  ;;  %608 = vmatpush1.msra.mxu0 %v546_v22 }
 0x3b2   :  { %609 = vmatprep.subr.mxu0 %v1201_v1 }
 0x3b3   :  { %390 = vrot.lane.b32.xlu0 %v373_v3, %s1199_s23  ;;  %610 = vmatpush1.msra.mxu0 %v545_v23  ;;  %v500_v23 = vld [vmem:[%s1765_s3] sm:$0xff] }
 0x3b4   :  { %611 = vmatprep.subr.mxu0 %v1201_v1 }
 0x3b5   :  { %388 = vrot.lane.b32.xlu1 %v372_v8, %s1199_s23  ;;  %612 = vmatpush1.msra.mxu0 %v544_v24 }
 0x3b6   :  { %613 = vmatprep.subr.mxu0 %v1201_v1 }
 0x3b7   :  { %614 = vmatpush1.msra.mxu0 %v543_v25  ;;  %v503_v25 = vld [vmem:[%s1765_s3 + $0x18] sm:$0xff] }
 0x3b8   :  { %615 = vmatprep.subr.mxu0 %v1201_v1 }
 0x3b9   :  { %616 = vmatpush1.msra.mxu0 %v542_v26  ;;  %v502_v26 = vld [vmem:[%s1765_s3 + $0x10] sm:$0xff] }
 0x3ba   :  { %617 = vmatprep.subr.mxu0 %v1201_v1 }
 0x3bb   :  { %618 = vmatpush1.msra.mxu0 %v541_v27  ;;  %v505_v27 = vld [vmem:[%s1765_s3 + $0x28] sm:$0xff] }
 0x3bc   :  { %619 = vmatprep.subr.mxu0 %v1201_v1 }
 0x3bd   :  { %620 = vmatpush1.msra.mxu0 %v540_v28  ;;  %v504_v28 = vld [vmem:[%s1765_s3 + $0x20] sm:$0xff] }
 0x3be   :  { %621 = vmatprep.subr.mxu0 %v1201_v1 }
 0x419   :  { %v403_v29 = vpop.permute.xlu0 %402 }
 0x41a   :  { %419 = vst.msk [vmem:[#allocation2 + $0x38] sm:$0xff] %vm36_vm1, %v403_v29  ;;  %v507_v29 = vld [vmem:[%s1765_s3 + $0x38] sm:$0xff] }
 0x41b   :  { %v401_v30 = vpop.permute.xlu1 %400 }
 0x41c   :  { %418 = vst.msk [vmem:[#allocation2 + $0x30] sm:$0xff] %vm36_vm1, %v401_v30  ;;  %v506_v30 = vld [vmem:[%s1765_s3 + $0x30] sm:$0xff] }
 0x41d   :  { %v399_v31 = vpop.permute.xlu0 %398 }
 0x41e   :  { %417 = vst.msk [vmem:[#allocation2 + $0x28] sm:$0xff] %vm36_vm1, %v399_v31  ;;  %v509_v31 = vld [vmem:[%s1765_s3 + $0x48] sm:$0xff] }
 0x41f   :  { %v397_v32 = vpop.permute.xlu1 %396 }
 0x420   :  { %416 = vst.msk [vmem:[#allocation2 + $0x20] sm:$0xff] %vm36_vm1, %v397_v32  ;;  %v508_v32 = vld [vmem:[%s1765_s3 + $0x40] sm:$0xff] }
 0x421   :  { %v395_v33 = vpop.permute.xlu0 %394  ;;  %v427_v34 = vld [vmem:[#allocation2 + $0x38] sm:$0xff] }
 0x422   :  { %415 = vst.msk [vmem:[#allocation2 + $0x18] sm:$0xff] %vm36_vm1, %v395_v33  ;;  %450 = vrot.lane.b32.xlu0 %v427_v34, %s1200_s24  ;;  %v511_v33 = vld [vmem:[%s1765_s3 + $0x58] sm:$0xff] }
 0x423   :  { %v393_v35 = vpop.permute.xlu1 %392  ;;  %v426_v36 = vld [vmem:[#allocation2 + $0x30] sm:$0xff] }
 0x424   :  { %414 = vst.msk [vmem:[#allocation2 + $0x10] sm:$0xff] %vm36_vm1, %v393_v35  ;;  %448 = vrot.lane.b32.xlu1 %v426_v36, %s1200_s24  ;;  %v513_v35 = vld [vmem:[%s1765_s3 + $0x68] sm:$0xff] }
 0x425   :  { %v391_v37 = vpop.permute.xlu0 %390  ;;  %v425_v38 = vld [vmem:[#allocation2 + $0x28] sm:$0xff] }
 0x426   :  { %413 = vst.msk [vmem:[#allocation2 + $0x8] sm:$0xff] %vm36_vm1, %v391_v37  ;;  %446 = vrot.lane.b32.xlu0 %v425_v38, %s1200_s24  ;;  %v515_v37 = vld [vmem:[%s1765_s3 + $0x78] sm:$0xff] }
 0x427   :  { %v389_v39 = vpop.permute.xlu1 %388  ;;  %v424_v40 = vld [vmem:[#allocation2 + $0x20] sm:$0xff] }
 0x428   :  { %412 = vst.msk [vmem:[#allocation2] sm:$0xff] %vm36_vm1, %v389_v39  ;;  %444 = vrot.lane.b32.xlu1 %v424_v40, %s1200_s24  ;;  %v517_v39 = vld [vmem:[%s1765_s3 + $0x88] sm:$0xff]  ;;  %vm835_vm1 = vcmask 7168  }
 0x429   :  { %v423_v41 = vld [vmem:[#allocation2 + $0x18] sm:$0xff] }
 0x42a   :  { %442 = vrot.lane.b32.xlu0 %v423_v41, %s1200_s24 }
 0x42b   :  { %v422_v42 = vld [vmem:[#allocation2 + $0x10] sm:$0xff] }
 0x42c   :  { %440 = vrot.lane.b32.xlu1 %v422_v42, %s1200_s24 }
 0x42d   :  { %v421_v43 = vld [vmem:[#allocation2 + $0x8] sm:$0xff] }
 0x42e   :  { %438 = vrot.lane.b32.xlu0 %v421_v43, %s1200_s24 }
 0x42f   :  { %v420_v44 = vld [vmem:[#allocation2] sm:$0xff] }
 0x430   :  { %436 = vrot.lane.b32.xlu1 %v420_v44, %s1200_s24 }
 0x494   :  { %v451_v46 = vpop.permute.xlu0 %450 }
 0x495   :  { %v467_v47 = vsel %vm1256_vm7, %v451_v46, %v427_v34  ;;  %v475_v48 = vsel %vm1260_vm8, %v427_v34, %v451_v46  ;;  %v510_v34 = vld [vmem:[%s1765_s3 + $0x50] sm:$0xff] }
 0x496   :  { %483 = vst.msk [vmem:[#allocation3 + $0x38] sm:$0xff] %vm49_vm0, %v467_v47  ;;  %499 = vst.msk [vmem:[#allocation3 + $0xb8] sm:$0xff] %vm49_vm0, %v475_v48  ;;  %v449_v49 = vpop.permute.xlu1 %448  ;;  %v522_v46 = vld [vmem:[%s1765_s3 + $0xb0] sm:$0xff]  ;;  %v525_v47 = vld [vmem:[%s1765_s3 + $0xc8] sm:$0xff] }
 0x497   :  { %v466_v50 = vsel %vm1256_vm7, %v449_v49, %v426_v36  ;;  %v474_v51 = vsel %vm1260_vm8, %v426_v36, %v449_v49  ;;  %v512_v36 = vld [vmem:[%s1765_s3 + $0x60] sm:$0xff]  ;;  %v527_v49 = vld [vmem:[%s1765_s3 + $0xd8] sm:$0xff] }
 0x498   :  { %482 = vst.msk [vmem:[#allocation3 + $0x30] sm:$0xff] %vm49_vm0, %v466_v50  ;;  %498 = vst.msk [vmem:[#allocation3 + $0xb0] sm:$0xff] %vm49_vm0, %v474_v51  ;;  %v447_v52 = vpop.permute.xlu0 %446  ;;  %v524_v48 = vld [vmem:[%s1765_s3 + $0xc0] sm:$0xff]  ;;  %v526_v50 = vld [vmem:[%s1765_s3 + $0xd0] sm:$0xff] }
 0x499   :  { %v465_v53 = vsel %vm1256_vm7, %v447_v52, %v425_v38  ;;  %v473_v54 = vsel %vm1260_vm8, %v425_v38, %v447_v52  ;;  %v514_v38 = vld [vmem:[%s1765_s3 + $0x70] sm:$0xff]  ;;  %v529_v51 = vld [vmem:[%s1765_s3 + $0xe8] sm:$0xff]  ;;  %v528_v52 = vld [vmem:[%s1765_s3 + $0xe0] sm:$0xff] }
 0x49a   :  { %481 = vst.msk [vmem:[#allocation3 + $0x28] sm:$0xff] %vm49_vm0, %v465_v53  ;;  %497 = vst.msk [vmem:[#allocation3 + $0xa8] sm:$0xff] %vm49_vm0, %v473_v54  ;;  %v445_v55 = vpop.permute.xlu1 %444  ;;  %v531_v53 = vld [vmem:[%s1765_s3 + $0xf8] sm:$0xff]  ;;  %v530_v54 = vld [vmem:[%s1765_s3 + $0xf0] sm:$0xff] }
 0x49b   :  { %v464_v56 = vsel %vm1256_vm7, %v445_v55, %v424_v40  ;;  %v472_v57 = vsel %vm1260_vm8, %v424_v40, %v445_v55  ;;  %v516_v40 = vld [vmem:[%s1765_s3 + $0x80] sm:$0xff] }
 0x49c   :  { %480 = vst.msk [vmem:[#allocation3 + $0x20] sm:$0xff] %vm49_vm0, %v464_v56  ;;  %496 = vst.msk [vmem:[#allocation3 + $0xa0] sm:$0xff] %vm49_vm0, %v472_v57  ;;  %v443_v58 = vpop.permute.xlu0 %442 }
 0x49d   :  { %v463_v59 = vsel %vm1256_vm7, %v443_v58, %v423_v41  ;;  %v471_v60 = vsel %vm1260_vm8, %v423_v41, %v443_v58  ;;  %v539_v61 = vld [vmem:[#allocation3 + $0x38] sm:$0xff] }
 0x49e   :  { %479 = vst.msk [vmem:[#allocation3 + $0x18] sm:$0xff] %vm49_vm0, %v463_v59  ;;  %495 = vst.msk [vmem:[#allocation3 + $0x98] sm:$0xff] %vm49_vm0, %v471_v60  ;;  %v441_v62 = vpop.permute.xlu1 %440  ;;  %622 = vmatpush1.msra.mxu0 %v539_v61  ;;  %v555_v16 = vld [vmem:[#allocation3 + $0xb8] sm:$0xff] }
 0x49f   :  { %v462_v63 = vsel %vm1256_vm7, %v441_v62, %v422_v42  ;;  %v470_v0 = vsel %vm1260_vm8, %v422_v42, %v441_v62  ;;  %623 = vmatprep.subr.mxu0 %v1201_v1  ;;  %v538_v2 = vld [vmem:[#allocation3 + $0x30] sm:$0xff]  ;;  %v519_v41 = vld [vmem:[%s1765_s3 + $0x98] sm:$0xff] }
 0x4a0   :  { %478 = vst.msk [vmem:[#allocation3 + $0x10] sm:$0xff] %vm49_vm0, %v462_v63  ;;  %494 = vst.msk [vmem:[#allocation3 + $0x90] sm:$0xff] %vm49_vm0, %v470_v0  ;;  %v439_v3 = vpop.permute.xlu0 %438  ;;  %624 = vmatpush1.msra.mxu0 %v538_v2  ;;  %v554_v17 = vld [vmem:[#allocation3 + $0xb0] sm:$0xff] }
 0x4a1   :  { %v461_v4 = vsel %vm1256_vm7, %v439_v3, %v421_v43  ;;  %v469_v8 = vsel %vm1260_vm8, %v421_v43, %v439_v3  ;;  %625 = vmatprep.subr.mxu0 %v1201_v1  ;;  %v537_v9 = vld [vmem:[#allocation3 + $0x28] sm:$0xff]  ;;  %v518_v42 = vld [vmem:[%s1765_s3 + $0x90] sm:$0xff] }
 0x4a2   :  { %477 = vst.msk [vmem:[#allocation3 + $0x8] sm:$0xff] %vm49_vm0, %v461_v4  ;;  %493 = vst.msk [vmem:[#allocation3 + $0x88] sm:$0xff] %vm49_vm0, %v469_v8  ;;  %v437_v10 = vpop.permute.xlu1 %436  ;;  %626 = vmatpush1.msra.mxu0 %v537_v9  ;;  %v553_v18 = vld [vmem:[#allocation3 + $0xa8] sm:$0xff] }
 0x4a3   :  { %v460_v11 = vsel %vm1256_vm7, %v437_v10, %v420_v44  ;;  %v468_v12 = vsel %vm1260_vm8, %v420_v44, %v437_v10  ;;  %627 = vmatprep.subr.mxu0 %v1201_v1  ;;  %v536_v13 = vld [vmem:[#allocation3 + $0x20] sm:$0xff]  ;;  %v521_v43 = vld [vmem:[%s1765_s3 + $0xa8] sm:$0xff] }
 0x4a4   :  { %476 = vst.msk [vmem:[#allocation3] sm:$0xff] %vm49_vm0, %v460_v11  ;;  %492 = vst.msk [vmem:[#allocation3 + $0x80] sm:$0xff] %vm49_vm0, %v468_v12  ;;  %628 = vmatpush1.msra.mxu0 %v536_v13  ;;  %v552_v19 = vld [vmem:[#allocation3 + $0xa0] sm:$0xff] }
 0x4a5   :  { %629 = vmatprep.subr.mxu0 %v1201_v1  ;;  %v535_v14 = vld [vmem:[#allocation3 + $0x18] sm:$0xff]  ;;  %v520_v44 = vld [vmem:[%s1765_s3 + $0xa0] sm:$0xff] }
 0x4a6   :  { %630 = vmatpush1.msra.mxu0 %v535_v14  ;;  %v551_v20 = vld [vmem:[#allocation3 + $0x98] sm:$0xff] }
 0x4a7   :  { %631 = vmatprep.subr.mxu0 %v1201_v1  ;;  %v534_v15 = vld [vmem:[#allocation3 + $0x10] sm:$0xff] }
 0x4a8   :  { %632 = vmatpush1.msra.mxu0 %v534_v15  ;;  %v550_v21 = vld [vmem:[#allocation3 + $0x90] sm:$0xff] }
 0x4a9   :  { %633 = vmatprep.subr.mxu0 %v1201_v1  ;;  %v533_v6 = vld [vmem:[#allocation3 + $0x8] sm:$0xff] }
 0x4aa   :  { %634 = vmatpush1.msra.mxu0 %v533_v6  ;;  %v549_v22 = vld [vmem:[#allocation3 + $0x88] sm:$0xff] }
 0x4ab   :  { %635 = vmatprep.subr.mxu0 %v1201_v1  ;;  %v532_v7 = vld [vmem:[#allocation3] sm:$0xff] }
 0x4ac   :  { %636 = vmatpush1.msra.mxu0 %v532_v7  ;;  %v548_v24 = vld [vmem:[#allocation3 + $0x80] sm:$0xff] }
 0x4ad   :  { %653 = vmatprep.subr.mxu0 %v1201_v1 }
 0x4ae   :  { %654 = vmatpush2.msra.mxu0 %v555_v16 }
 0x4af   :  { %655 = vmatprep.subr.mxu0 %v1201_v1 }
 0x4b0   :  { %656 = vmatpush2.msra.mxu0 %v554_v17 }
 0x4b1   :  { %657 = vmatprep.subr.mxu0 %v1201_v1 }
 0x4b2   :  { %658 = vmatpush2.msra.mxu0 %v553_v18 }
 0x4b3   :  { %659 = vmatprep.subr.mxu0 %v1201_v1 }
 0x4b4   :  { %660 = vmatpush2.msra.mxu0 %v552_v19 }
 0x4b5   :  { %661 = vmatprep.subr.mxu0 %v1201_v1 }
 0x4b6   :  { %662 = vmatpush2.msra.mxu0 %v551_v20 }
 0x4b7   :  { %663 = vmatprep.subr.mxu0 %v1201_v1 }
 0x4b8   :  { %664 = vmatpush2.msra.mxu0 %v550_v21 }
 0x4b9   :  { %665 = vmatprep.subr.mxu0 %v1201_v1 }
 0x4ba   :  { %666 = vmatpush2.msra.mxu0 %v549_v22 }
 0x4bb   :  { %667 = vmatprep.subr.mxu0 %v1201_v1 }
 0x4bc   :  { %668 = vmatpush2.msra.mxu0 %v548_v24 }
 0x4bd   :  { %670 = vmatmul.mubr.f32.vlgmr.msra.gmra.mxu0 %v500_v23 }
 0x4be   :  { %1050 = vmatprep.mubr.msk.f32.mxu0 %vm556_vm10, %v503_v25 }
 0x4c1   :  { %675 = vmatmul.mubr.f32.gmra.mxu0 %v502_v26 }
 0x4c2   :  { %1051 = vmatprep.mubr.msk.f32.mxu0 %vm556_vm10, %v505_v27 }
 0x4c5   :  { %680 = vmatmul.mubr.f32.gmra.mxu0 %v504_v28 }
 0x4c6   :  { %1052 = vmatprep.mubr.msk.f32.mxu0 %vm556_vm10, %v507_v29 }
 0x4c9   :  { %685 = vmatmul.mubr.f32.gmra.mxu0 %v506_v30 }
 0x4ca   :  { %1053 = vmatprep.mubr.msk.f32.mxu0 %vm556_vm10, %v509_v31 }
 0x4cd   :  { %690 = vmatmul.mubr.f32.gmra.mxu0 %v508_v32 }
 0x4ce   :  { %1054 = vmatprep.mubr.msk.f32.mxu0 %vm556_vm10, %v511_v33 }
 0x4d1   :  { %695 = vmatmul.mubr.f32.gmra.mxu0 %v510_v34 }
 0x4d2   :  { %1055 = vmatprep.mubr.msk.f32.mxu0 %vm556_vm10, %v513_v35 }
 0x4d5   :  { %700 = vmatmul.mubr.f32.gmra.mxu0 %v512_v36 }
 0x4d6   :  { %1056 = vmatprep.mubr.msk.f32.mxu0 %vm556_vm10, %v515_v37 }
 0x4d9   :  { %705 = vmatmul.mubr.f32.gmra.mxu0 %v514_v38 }
 0x4da   :  { %1057 = vmatprep.mubr.msk.f32.mxu0 %vm556_vm10, %v517_v39 }
 0x4dd   :  { %710 = vmatmul.mubr.f32.gmra.mxu0 %v516_v40 }
 0x4de   :  { %1058 = vmatprep.mubr.msk.f32.mxu0 %vm556_vm10, %v519_v41 }
 0x4e1   :  { %715 = vmatmul.mubr.f32.gmra.mxu0 %v518_v42 }
 0x4e2   :  { %1059 = vmatprep.mubr.msk.f32.mxu0 %vm556_vm10, %v521_v43 }
 0x4e5   :  { %720 = vmatmul.mubr.f32.gmra.mxu0 %v520_v44 }
 0x4e6   :  { %1060 = vmatprep.mubr.msk.f32.mxu0 %vm556_vm10, %v523_v45 }
 0x4e9   :  { %725 = vmatmul.mubr.f32.gmra.mxu0 %v522_v46 }
 0x4ea   :  { %1061 = vmatprep.mubr.msk.f32.mxu0 %vm556_vm10, %v525_v47 }
 0x4ed   :  { %730 = vmatmul.mubr.f32.gmra.mxu0 %v524_v48 }
 0x4ee   :  { %1062 = vmatprep.mubr.msk.f32.mxu0 %vm556_vm10, %v527_v49 }
 0x4f1   :  { %735 = vmatmul.mubr.f32.gmra.mxu0 %v526_v50 }
 0x4f2   :  { %1063 = vmatprep.mubr.msk.f32.mxu0 %vm556_vm10, %v529_v51 }
 0x4f5   :  { %740 = vmatmul.mubr.f32.gmra.mxu0 %v528_v52 }
 0x4f6   :  { %1064 = vmatprep.mubr.msk.f32.mxu0 %vm556_vm10, %v531_v53 }
 0x4f9   :  { %745 = vmatmul.mubr.f32.gmra.mxu0 %v530_v54 }
 0x57d   :  { %v1573_v55 = vpop.f32.mrf.mxu0 }
 0x57e   :  { %v750_v57 = vmax.f32 %v1573_v55, 0.0  ;;  %v1203_v55 = vmov 0  }
 0x57f   :  { %v673_v58 = vpop.f32.mrf.mxu0  ;;  %1197 = vset.pattern.permute.xlu1 %v1203_v55  ;;  %1198 = vset.pattern.permute.xlu0 %v1203_v55 }
 0x580   :  { %v1584_v59 = vsel %vm1575_vm13, %v750_v57, -inf }
 0x581   :  { %v1586_v60 = vpop.f32.mrf.mxu0 }
 0x583   :  { %v678_v61 = vpop.f32.mrf.mxu0 }
 0x585   :  { %v1588_v62 = vpop.f32.mrf.mxu0 }
 0x587   :  { %v683_v63 = vpop.f32.mrf.mxu0 }
 0x589   :  { %v1590_v0 = vpop.f32.mrf.mxu0 }
 0x58b   :  { %v688_v2 = vpop.f32.mrf.mxu0 }
 0x58d   :  { %v1592_v3 = vpop.f32.mrf.mxu0 }
 0x58f   :  { %v693_v4 = vpop.f32.mrf.mxu0 }
 0x591   :  { %v1594_v8 = vpop.f32.mrf.mxu0 }
 0x593   :  { %v698_v9 = vpop.f32.mrf.mxu0 }
 0x595   :  { %v1596_v10 = vpop.f32.mrf.mxu0 }
 0x597   :  { %v703_v11 = vpop.f32.mrf.mxu0 }
 0x599   :  { %v1598_v12 = vpop.f32.mrf.mxu0 }
 0x59a   :  { %v757_v9 = vmax.f32 %v1598_v12, 0.0 }
 0x59b   :  { %v708_v13 = vpop.f32.mrf.mxu0 }
 0x59c   :  { %v778_v12 = vsel %vm767_vm14, %v757_v9, -inf }
 0x59d   :  { %v711_v14 = vpop.f32.mrf.mxu0 }
 0x59e   :  { %v758_v15 = vmax.f32 %v711_v14, 0.0 }
 0x59f   :  { %v713_v6 = vpop.f32.mrf.mxu0 }
 0x5a0   :  { %v865_v7 = vsel %vm1575_vm13, %v758_v15, -inf  ;;  %v779_v16 = vsel %vm767_vm14, %v758_v15, -inf }
 0x5a1   :  { %v716_v17 = vpop.f32.mrf.mxu0  ;;  %v897_v18 = vsel %vm49_vm0, %v865_v7, -inf  ;;  %v811_v19 = vsel %vm49_vm0, %v779_v16, -inf }
 0x5a2   :  { %v759_v20 = vmax.f32 %v716_v17, 0.0  ;;  %898 = vmax.xlane.f32.xlu0 %v897_v18  ;;  %812 = vmax.xlane.f32.xlu1 %v811_v19  ;;  %v756_v17 = vmax.f32 %v1596_v10, 0.0  ;;  %v808_v19 = vsel %vm49_vm0, %v778_v12, -inf }
 0x5a3   :  { %v718_v21 = vpop.f32.mrf.mxu0 }
 0x5a4   :  { %v866_v22 = vsel %vm1575_vm13, %v759_v20, -inf  ;;  %v780_v23 = vsel %vm767_vm14, %v759_v20, -inf  ;;  %v755_v20 = vmax.f32 %v1594_v8, 0.0  ;;  %v777_v21 = vsel %vm767_vm14, %v756_v17, -inf }
 0x5a5   :  { %v721_v24 = vpop.f32.mrf.mxu0  ;;  %v900_v25 = vsel %vm49_vm0, %v866_v22, -inf  ;;  %v814_v26 = vsel %vm49_vm0, %v780_v23, -inf  ;;  %v864_v22 = vsel %vm1575_vm13, %v757_v9, -inf  ;;  %v805_v10 = vsel %vm49_vm0, %v777_v21, -inf }
 0x5a6   :  { %v760_v27 = vmax.f32 %v721_v24, 0.0  ;;  %901 = vmax.xlane.f32.xlu0 %v900_v25  ;;  %815 = vmax.xlane.f32.xlu1 %v814_v26  ;;  %v894_v23 = vsel %vm49_vm0, %v864_v22, -inf  ;;  %v754_v24 = vmax.f32 %v1592_v3, 0.0  ;;  %v776_v25 = vsel %vm767_vm14, %v755_v20, -inf }
 0x5a7   :  { %v723_v28 = vpop.f32.mrf.mxu0  ;;  %v863_v8 = vsel %vm1575_vm13, %v756_v17, -inf  ;;  %v802_v26 = vsel %vm49_vm0, %v776_v25, -inf  ;;  %v862_v3 = vsel %vm1575_vm13, %v755_v20, -inf }
 0x5a8   :  { %v867_v29 = vsel %vm1575_vm13, %v760_v27, -inf  ;;  %v781_v30 = vsel %vm767_vm14, %v760_v27, -inf  ;;  %v891_v27 = vsel %vm49_vm0, %v863_v8, -inf  ;;  %v753_v28 = vmax.f32 %v1590_v0, 0.0 }
 0x5a9   :  { %v726_v31 = vpop.f32.mrf.mxu0  ;;  %v903_v32 = vsel %vm49_vm0, %v867_v29, -inf  ;;  %v817_v33 = vsel %vm49_vm0, %v781_v30, -inf  ;;  %v775_v29 = vsel %vm767_vm14, %v754_v24, -inf  ;;  %v861_v0 = vsel %vm1575_vm13, %v754_v24, -inf }
 0x5aa   :  { %v761_v34 = vmax.f32 %v726_v31, 0.0  ;;  %904 = vmax.xlane.f32.xlu0 %v903_v32  ;;  %818 = vmax.xlane.f32.xlu1 %v817_v33  ;;  %v799_v30 = vsel %vm49_vm0, %v775_v29, -inf  ;;  %v888_v31 = vsel %vm49_vm0, %v862_v3, -inf  ;;  %v752_v32 = vmax.f32 %v1588_v62, 0.0 }
 0x5ab   :  { %v728_v35 = vpop.f32.mrf.mxu0  ;;  %v774_v33 = vsel %vm767_vm14, %v753_v28, -inf  ;;  %v860_v62 = vsel %vm1575_vm13, %v753_v28, -inf }
 0x5ac   :  { %v868_v36 = vsel %vm1575_vm13, %v761_v34, -inf  ;;  %v782_v37 = vsel %vm767_vm14, %v761_v34, -inf  ;;  %v796_v34 = vsel %vm49_vm0, %v774_v33, -inf  ;;  %v885_v35 = vsel %vm49_vm0, %v861_v0, -inf }
 0x5ad   :  { %v731_v38 = vpop.f32.mrf.mxu0  ;;  %v906_v39 = vsel %vm49_vm0, %v868_v36, -inf  ;;  %v820_v40 = vsel %vm49_vm0, %v782_v37, -inf  ;;  %v751_v36 = vmax.f32 %v1586_v60, 0.0  ;;  %v773_v37 = vsel %vm767_vm14, %v752_v32, -inf }
 0x5ae   :  { %v762_v41 = vmax.f32 %v731_v38, 0.0  ;;  %907 = vmax.xlane.f32.xlu0 %v906_v39  ;;  %821 = vmax.xlane.f32.xlu1 %v820_v40  ;;  %v793_v38 = vsel %vm49_vm0, %v773_v37, -inf  ;;  %v882_v39 = vsel %vm49_vm0, %v860_v62, -inf  ;;  %v859_v60 = vsel %vm1575_vm13, %v752_v32, -inf }
 0x5af   :  { %v733_v42 = vpop.f32.mrf.mxu0  ;;  %v772_v40 = vsel %vm767_vm14, %v751_v36, -inf }
 0x5b0   :  { %v869_v43 = vsel %vm1575_vm13, %v762_v41, -inf  ;;  %v783_v44 = vsel %vm767_vm14, %v762_v41, -inf  ;;  %v790_v41 = vsel %vm49_vm0, %v772_v40, -inf  ;;  %v879_v42 = vsel %vm49_vm0, %v859_v60, -inf }
 0x5b1   :  { %v736_v45 = vpop.f32.mrf.mxu0  ;;  %v909_v46 = vsel %vm49_vm0, %v869_v43, -inf  ;;  %v823_v47 = vsel %vm49_vm0, %v783_v44, -inf  ;;  %v771_v43 = vsel %vm767_vm14, %v750_v57, -inf  ;;  %v858_v44 = vsel %vm1575_vm13, %v751_v36, -inf  ;;  %v954_v36 = vld [vmem:[%s1767_s4] sm:$0x1f] }
 0x5b2   :  { %v763_v48 = vmax.f32 %v736_v45, 0.0  ;;  %910 = vmax.xlane.f32.xlu0 %v909_v46  ;;  %824 = vmax.xlane.f32.xlu1 %v823_v47  ;;  %v787_v45 = vsel %vm49_vm0, %v771_v43, -inf  ;;  %v876_v46 = vsel %vm49_vm0, %v858_v44, -inf  ;;  %v873_v47 = vsel %vm49_vm0, %v1584_v59, -inf }
 0x5b3   :  { %v738_v49 = vpop.f32.mrf.mxu0 }
 0x5b4   :  { %v870_v50 = vsel %vm1575_vm13, %v763_v48, -inf  ;;  %v784_v51 = vsel %vm767_vm14, %v763_v48, -inf }
 0x5b5   :  { %v741_v52 = vpop.f32.mrf.mxu0  ;;  %v912_v53 = vsel %vm49_vm0, %v870_v50, -inf  ;;  %v826_v54 = vsel %vm49_vm0, %v784_v51, -inf }
 0x5b6   :  { %v764_v58 = vmax.f32 %v741_v52, 0.0  ;;  %913 = vmax.xlane.f32.xlu0 %v912_v53  ;;  %827 = vmax.xlane.f32.xlu1 %v826_v54 }
 0x5b7   :  { %v743_v61 = vpop.f32.mrf.mxu0 }
 0x5b8   :  { %v785_v63 = vsel %vm767_vm14, %v764_v58, -inf  ;;  %v871_v13 = vsel %vm1575_vm13, %v764_v58, -inf }
 0x5b9   :  { %v746_v2 = vpop.f32.mrf.mxu0  ;;  %v829_v4 = vsel %vm49_vm0, %v785_v63, -inf  ;;  %v915_v7 = vsel %vm49_vm0, %v871_v13, -inf }
 0x5ba   :  { %v765_v11 = vmax.f32 %v746_v2, 0.0  ;;  %830 = vmax.xlane.f32.xlu0 %v829_v4 }
 0x5bb   :  { %v748_v14 = vpop.f32.mrf.mxu0 }
 0x5bc   :  { %v872_v15 = vsel %vm1575_vm13, %v765_v11, -inf  ;;  %v786_v6 = vsel %vm767_vm14, %v765_v11, -inf }
 0x5bd   :  { %v918_v16 = vsel %vm49_vm0, %v872_v15, -inf  ;;  %v832_v18 = vsel %vm49_vm0, %v786_v6, -inf  ;;  %vm1031_vm0 = vcmask 12288  }
 0x5be   :  { %916 = vmax.xlane.f32.xlu0 %v915_v7  ;;  %919 = vmax.xlane.f32.xlu1 %v918_v16 }
 0x5c2   :  { %809 = vmax.xlane.f32.xlu1 %v808_v19  ;;  %833 = vmax.xlane.f32.xlu0 %v832_v18 }
 0x5c6   :  { %806 = vmax.xlane.f32.xlu1 %v805_v10  ;;  %895 = vmax.xlane.f32.xlu0 %v894_v23 }
 0x5ca   :  { %803 = vmax.xlane.f32.xlu1 %v802_v26  ;;  %892 = vmax.xlane.f32.xlu0 %v891_v27 }
 0x5ce   :  { %800 = vmax.xlane.f32.xlu1 %v799_v30  ;;  %889 = vmax.xlane.f32.xlu0 %v888_v31 }
 0x5d2   :  { %797 = vmax.xlane.f32.xlu1 %v796_v34  ;;  %886 = vmax.xlane.f32.xlu0 %v885_v35 }
 0x5d6   :  { %794 = vmax.xlane.f32.xlu1 %v793_v38  ;;  %883 = vmax.xlane.f32.xlu0 %v882_v39 }
 0x5da   :  { %791 = vmax.xlane.f32.xlu1 %v790_v41  ;;  %880 = vmax.xlane.f32.xlu0 %v879_v42 }
 0x5de   :  { %788 = vmax.xlane.f32.xlu1 %v787_v45  ;;  %877 = vmax.xlane.f32.xlu0 %v876_v46 }
 0x5e2   :  { %874 = vmax.xlane.f32.xlu0 %v873_v47 }
 0x5ef   :  { %958 = vperm.xlu1 %1197, %v955_v5  }
 0x62b   :  { %v899_v56 = vpop.xlane.xlu0 %898  ;;  %v813_v57 = vpop.xlane.xlu1 %812 }
 0x62c   :  { %844 = vst.msk [vmem:[#allocation4 + $0x40] sm:$0xff] %vm835_vm1, %v813_v57 }
 0x62d   :  { %930 = vst.msk [vmem:[#allocation4 + $0x40] sm:$0xff] %vm921_vm2, %v899_v56 }
 0x62f   :  { %v902_v59 = vpop.xlane.xlu0 %901  ;;  %v816_v48 = vpop.xlane.xlu1 %815 }
 0x630   :  { %845 = vst.msk [vmem:[#allocation4 + $0x48] sm:$0xff] %vm835_vm1, %v816_v48 }
 0x631   :  { %931 = vst.msk [vmem:[#allocation4 + $0x48] sm:$0xff] %vm921_vm2, %v902_v59 }
 0x633   :  { %v905_v49 = vpop.xlane.xlu0 %904  ;;  %v819_v50 = vpop.xlane.xlu1 %818 }
 0x634   :  { %846 = vst.msk [vmem:[#allocation4 + $0x50] sm:$0xff] %vm835_vm1, %v819_v50  ;;  %v946_v8 = vld [vmem:[#allocation4 + $0x40] sm:$0xff] }
 0x635   :  { %932 = vst.msk [vmem:[#allocation4 + $0x50] sm:$0xff] %vm921_vm2, %v905_v49 }
 0x637   :  { %v908_v51 = vpop.xlane.xlu0 %907  ;;  %v822_v52 = vpop.xlane.xlu1 %821 }
 0x638   :  { %847 = vst.msk [vmem:[#allocation4 + $0x58] sm:$0xff] %vm835_vm1, %v822_v52  ;;  %v947_v25 = vld [vmem:[#allocation4 + $0x48] sm:$0xff] }
 0x639   :  { %933 = vst.msk [vmem:[#allocation4 + $0x58] sm:$0xff] %vm921_vm2, %v908_v51 }
 0x63b   :  { %v911_v53 = vpop.xlane.xlu0 %910  ;;  %v825_v54 = vpop.xlane.xlu1 %824 }
 0x63c   :  { %848 = vst.msk [vmem:[#allocation4 + $0x60] sm:$0xff] %vm835_vm1, %v825_v54  ;;  %v948_v10 = vld [vmem:[#allocation4 + $0x50] sm:$0xff] }
 0x63d   :  { %934 = vst.msk [vmem:[#allocation4 + $0x60] sm:$0xff] %vm921_vm2, %v911_v53 }
 0x63f   :  { %v914_v58 = vpop.xlane.xlu0 %913  ;;  %v828_v61 = vpop.xlane.xlu1 %827 }
 0x640   :  { %849 = vst.msk [vmem:[#allocation4 + $0x68] sm:$0xff] %vm835_vm1, %v828_v61  ;;  %v949_v22 = vld [vmem:[#allocation4 + $0x58] sm:$0xff] }
 0x641   :  { %935 = vst.msk [vmem:[#allocation4 + $0x68] sm:$0xff] %vm921_vm2, %v914_v58 }
 0x643   :  { %v831_v63 = vpop.xlane.xlu0 %830 }
 0x644   :  { %850 = vst.msk [vmem:[#allocation4 + $0x70] sm:$0xff] %vm835_vm1, %v831_v63  ;;  %v950_v19 = vld [vmem:[#allocation4 + $0x60] sm:$0xff] }
 0x647   :  { %v917_v2 = vpop.xlane.xlu0 %916  ;;  %v920_v4 = vpop.xlane.xlu1 %919 }
 0x648   :  { %936 = vst.msk [vmem:[#allocation4 + $0x70] sm:$0xff] %vm921_vm2, %v917_v2  ;;  %v951_v18 = vld [vmem:[#allocation4 + $0x68] sm:$0xff] }
 0x64b   :  { %v810_v9 = vpop.xlane.xlu1 %809  ;;  %v834_v11 = vpop.xlane.xlu0 %833 }
 0x64c   :  { %843 = vst.msk [vmem:[#allocation4 + $0x38] sm:$0xff] %vm835_vm1, %v810_v9  ;;  %851 = vst.msk [vmem:[#allocation4 + $0x78] sm:$0xff] %vm835_vm1, %v834_v11 }
 0x64d   :  { %937 = vst.msk [vmem:[#allocation4 + $0x78] sm:$0xff] %vm921_vm2, %v920_v4 }
 0x64f   :  { %v807_v13 = vpop.xlane.xlu1 %806  ;;  %v896_v14 = vpop.xlane.xlu0 %895  ;;  %v952_v16 = vld [vmem:[#allocation4 + $0x70] sm:$0xff] }
 0x650   :  { %842 = vst.msk [vmem:[#allocation4 + $0x30] sm:$0xff] %vm835_vm1, %v807_v13 }
 0x651   :  { %929 = vst.msk [vmem:[#allocation4 + $0x38] sm:$0xff] %vm921_vm2, %v896_v14 }
 0x653   :  { %v804_v15 = vpop.xlane.xlu1 %803  ;;  %v893_v6 = vpop.xlane.xlu0 %892 }
 0x654   :  { %841 = vst.msk [vmem:[#allocation4 + $0x28] sm:$0xff] %vm835_vm1, %v804_v15  ;;  %v953_v7 = vld [vmem:[#allocation4 + $0x78] sm:$0xff] }
 0x655   :  { %928 = vst.msk [vmem:[#allocation4 + $0x30] sm:$0xff] %vm921_vm2, %v893_v6  ;;  %1158 = vmatpush3.msra.mxu1 %v953_v7 }
 0x656   :  { %1159 = vmatprep.subr.mxu1 %v1201_v1 }
 0x657   :  { %v801_v17 = vpop.xlane.xlu1 %800  ;;  %1160 = vmatpush3.msra.mxu1 %v952_v16  ;;  %v890_v12 = vpop.xlane.xlu0 %889 }
 0x658   :  { %840 = vst.msk [vmem:[#allocation4 + $0x20] sm:$0xff] %vm835_vm1, %v801_v17  ;;  %1161 = vmatprep.subr.mxu1 %v1201_v1  ;;  %v945_v28 = vld [vmem:[#allocation4 + $0x38] sm:$0xff] }
 0x659   :  { %927 = vst.msk [vmem:[#allocation4 + $0x28] sm:$0xff] %vm921_vm2, %v890_v12  ;;  %1162 = vmatpush3.msra.mxu1 %v951_v18 }
 0x65a   :  { %1163 = vmatprep.subr.mxu1 %v1201_v1 }
 0x65b   :  { %v798_v20 = vpop.xlane.xlu1 %797  ;;  %1164 = vmatpush3.msra.mxu1 %v950_v19  ;;  %v887_v21 = vpop.xlane.xlu0 %886 }
 0x65c   :  { %839 = vst.msk [vmem:[#allocation4 + $0x18] sm:$0xff] %vm835_vm1, %v798_v20  ;;  %1165 = vmatprep.subr.mxu1 %v1201_v1  ;;  %v944_v29 = vld [vmem:[#allocation4 + $0x30] sm:$0xff] }
 0x65d   :  { %926 = vst.msk [vmem:[#allocation4 + $0x20] sm:$0xff] %vm921_vm2, %v887_v21  ;;  %1166 = vmatpush3.msra.mxu1 %v949_v22 }
 0x65e   :  { %1167 = vmatprep.subr.mxu1 %v1201_v1 }
 0x65f   :  { %v795_v23 = vpop.xlane.xlu1 %794  ;;  %1168 = vmatpush3.msra.mxu1 %v948_v10  ;;  %v884_v24 = vpop.xlane.xlu0 %883 }
 0x660   :  { %838 = vst.msk [vmem:[#allocation4 + $0x10] sm:$0xff] %vm835_vm1, %v795_v23  ;;  %1169 = vmatprep.subr.mxu1 %v1201_v1  ;;  %v943_v31 = vld [vmem:[#allocation4 + $0x28] sm:$0xff] }
 0x661   :  { %925 = vst.msk [vmem:[#allocation4 + $0x18] sm:$0xff] %vm921_vm2, %v884_v24  ;;  %1170 = vmatpush3.msra.mxu1 %v947_v25 }
 0x662   :  { %1171 = vmatprep.subr.mxu1 %v1201_v1 }
 0x663   :  { %v792_v26 = vpop.xlane.xlu1 %791  ;;  %1172 = vmatpush3.msra.mxu1 %v946_v8  ;;  %v881_v27 = vpop.xlane.xlu0 %880 }
 0x664   :  { %837 = vst.msk [vmem:[#allocation4 + $0x8] sm:$0xff] %vm835_vm1, %v792_v26  ;;  %1173 = vmatprep.subr.mxu1 %v1201_v1  ;;  %v942_v32 = vld [vmem:[#allocation4 + $0x20] sm:$0xff] }
 0x665   :  { %924 = vst.msk [vmem:[#allocation4 + $0x10] sm:$0xff] %vm921_vm2, %v881_v27  ;;  %1174 = vmatpush3.msra.mxu1 %v945_v28 }
 0x666   :  { %1175 = vmatprep.subr.mxu1 %v1201_v1 }
 0x667   :  { %v789_v3 = vpop.xlane.xlu1 %788  ;;  %1176 = vmatpush3.msra.mxu1 %v944_v29  ;;  %v878_v30 = vpop.xlane.xlu0 %877 }
 0x668   :  { %836 = vst.msk [vmem:[#allocation4] sm:$0xff] %vm835_vm1, %v789_v3  ;;  %1177 = vmatprep.subr.mxu1 %v1201_v1  ;;  %v941_v0 = vld [vmem:[#allocation4 + $0x18] sm:$0xff] }
 0x669   :  { %923 = vst.msk [vmem:[#allocation4 + $0x8] sm:$0xff] %vm921_vm2, %v878_v30  ;;  %1178 = vmatpush3.msra.mxu1 %v943_v31 }
 0x66a   :  { %1179 = vmatprep.subr.mxu1 %v1201_v1 }
 0x66b   :  { %1180 = vmatpush3.msra.mxu1 %v942_v32  ;;  %v875_v33 = vpop.xlane.xlu0 %874  ;;  %v959_v62 = vpop.permute.xlu1 %958 }
 0x66c   :  { %922 = vst.msk [vmem:[#allocation4] sm:$0xff] %vm921_vm2, %v875_v33  ;;  %1181 = vmatprep.subr.mxu1 %v1201_v1  ;;  %v940_v34 = vld [vmem:[#allocation4 + $0x10] sm:$0xff] }
 0x66d   :  { %1182 = vmatpush3.msra.mxu1 %v941_v0 }
 0x66e   :  { %1183 = vmatprep.subr.mxu1 %v1201_v1 }
 0x66f   :  { %1184 = vmatpush3.msra.mxu1 %v940_v34 }
 0x670   :  { %v939_v35 = vld [vmem:[#allocation4 + $0x8] sm:$0xff]  ;;  %1185 = vmatprep.subr.mxu1 %v1201_v1 }
 0x671   :  { %1186 = vmatpush3.msra.mxu1 %v939_v35 }
 0x672   :  { %1187 = vmatprep.subr.mxu1 %v1201_v1 }
 0x673   :  { %v938_v37 = vld [vmem:[#allocation4] sm:$0xff] }
 0x674   :  { %1188 = vmatpush3.msra.mxu1 %v938_v37 }
 0x675   :  { %1190 = vmatmul.mubr.f32.vlgmr.msra.gmra.mxu1 %v954_v36 }
 0x735   :  { %v1027_v38 = vpop.f32.mrf.mxu1 }
 0x736   :  { %v1028_v39 = vadd.f32 %v1027_v38, %v959_v62 }
 0x737   :  { %v1191_v40 = vpop.f32.mrf.mxu1 }
 0x738   :  { %1032 = vst.msk [vmem:[%s1768_s6] sm:$0x1f] %vm1031_vm0, %v1028_v39 }

</bundles_post_ra>
